<compile_context>
chip_gen: v7x
topology: tpu7x:2x2x1
jax: 0.10.0
libtpu: 0.0.40
codegen_flags: <defaults>
</compile_context>

<pallas_src>
import functools

import jax
import jax.numpy as jnp
from jax.experimental import pallas as pl
from jax.experimental.pallas import tpu as pltpu


def _weight_adapter_kernel(x_ref, w1_ref, w2_ref, o_ref, *, scalar, use_bf16_matmul):
    # x_ref : (Tm, C)   row tile of the (flattened) input
    # w1_ref: (C, H)    first Linear weight, pre-transposed  (H = C // reduction)
    # w2_ref: (H, C)    second Linear weight, pre-transposed
    # o_ref : (Tm, C)
    x = x_ref[...].astype(jnp.float32) * scalar            # scaled input, reused as the gate operand

    if use_bf16_matmul:
        a1, b1 = x.astype(jnp.bfloat16), w1_ref[...].astype(jnp.bfloat16)
    else:
        a1, b1 = x, w1_ref[...]
    h = jnp.dot(a1, b1, preferred_element_type=jnp.float32)   # (Tm, H)  MXU
    h = jnp.maximum(h, 0.0)                                    # ReLU (VPU)

    if use_bf16_matmul:
        a2, b2 = h.astype(jnp.bfloat16), w2_ref[...].astype(jnp.bfloat16)
    else:
        a2, b2 = h, w2_ref[...]
    y = jnp.dot(a2, b2, preferred_element_type=jnp.float32)    # (Tm, C)  MXU
    y = jnp.maximum(y, 0.0)                                    # ReLU (VPU)

    gate = 1.0 / (1.0 + jnp.exp(-y))                           # sigmoid (exp on EUP)
    o_ref[...] = (gate * x).astype(o_ref.dtype)                # lane-dense store


def weight_adapter_forward(inputs, w1, w2, *, scalar=10.0, row_tile=256,
                           use_bf16_matmul=False):
    """Pallas implementation of WeightAdapter.forward.

    inputs: (..., C) float32
    w1:     (C // reduction, C)  -- torch nn.Linear weight layout (out, in)
    w2:     (C, C // reduction)
    returns: same shape as `inputs`
    """
    orig_shape = inputs.shape
    C = orig_shape[-1]
    H = w1.shape[0]
    assert w1.shape == (H, C), w1.shape
    assert w2.shape == (C, H), w2.shape

    x2d = inputs.reshape(-1, C)
    M = x2d.shape[0]

    # Pre-transpose once in the wrapper so the kernel does plain x @ W.
    w1t = jnp.asarray(w1).T    # (C, H)
    w2t = jnp.asarray(w2).T    # (H, C)

    # Row tile: fill the MXU M dimension; use the full extent if the input is small.
    tm = M if M <= row_tile else row_tile
    m_pad = pl.cdiv(M, tm) * tm
    if m_pad != M:
        x2d = jnp.pad(x2d, ((0, m_pad - M), (0, 0)))

    out2d = pl.pallas_call(
        functools.partial(_weight_adapter_kernel, scalar=float(scalar),
                          use_bf16_matmul=use_bf16_matmul),
        out_shape=jax.ShapeDtypeStruct((m_pad, C), inputs.dtype),
        grid_spec=pltpu.PrefetchScalarGridSpec(
            num_scalar_prefetch=0,
            grid=(m_pad // tm,),
            in_specs=[
                pl.BlockSpec((tm, C), lambda i: (i, 0)),   # one row tile per step
                pl.BlockSpec((C, H), lambda i: (0, 0)),    # resident W1^T
                pl.BlockSpec((H, C), lambda i: (0, 0)),    # resident W2^T
            ],
            out_specs=pl.BlockSpec((tm, C), lambda i: (i, 0)),
        ),
        compiler_params=pltpu.CompilerParams(
            dimension_semantics=("parallel",)),
    )(x2d, w1t, w2t)

    return out2d[:M].reshape(orig_shape)


def _reference_forward(inputs, w1, w2, scalar=10.0):
    # Pure-JAX mirror of the PyTorch forward for verification.
    x = scalar * inputs
    h = jnp.maximum(x @ w1.T, 0.0)
    y = jnp.maximum(h @ w2.T, 0.0)
    return jax.nn.sigmoid(y) * x


if __name__ == "__main__":
    key = jax.random.PRNGKey(0)
    k_x, k_w1, k_w2 = jax.random.split(key, 3)

    # Small shapes consistent with the module: (batch, seq, c_in), reduction=4.
    batch, seq, c_in = 2, 8, 32
    reduction, scalar = 4, 10.0
    c_hidden = c_in // reduction

    inputs = jax.random.normal(k_x, (batch, seq, c_in), dtype=jnp.float32)
    w1 = jax.random.normal(k_w1, (c_hidden, c_in), dtype=jnp.float32) * (1.0 / (c_in ** 0.5))
    w2 = jax.random.normal(k_w2, (c_in, c_hidden), dtype=jnp.float32) * (1.0 / (c_hidden ** 0.5))

    out = weight_adapter_forward(inputs, w1, w2, scalar=scalar)
    out = jax.block_until_ready(out)

    expected = _reference_forward(inputs, w1, w2, scalar=scalar)
    assert out.shape == inputs.shape, out.shape
    if not bool(jnp.allclose(out, expected, atol=1e-3, rtol=1e-3)):
        max_err = float(jnp.max(jnp.abs(out - expected)))
        raise AssertionError(f"mismatch: max abs err = {max_err}\nkernel={out}\nref={expected}")
    print("KERNEL_OK")
</pallas_src>

<mosaic_0001>
module attributes {stable_mosaic.version = 11 : i64} {
  func.func @_weight_adapter_kernel(%arg0: i32, %arg1: memref<16x32xf32, #tpu.memory_space<vmem>>, %arg2: memref<32x8xf32, #tpu.memory_space<vmem>>, %arg3: memref<8x32xf32, #tpu.memory_space<vmem>>, %arg4: memref<16x32xf32, #tpu.memory_space<vmem>>) attributes {dimension_semantics = [#tpu.dimension_semantics<parallel>], iteration_bounds = array<i64: 1>, scalar_prefetch = 0 : i64, scratch_operands = 0 : i64, tpu.core_type = #tpu.core_type<tc>, window_params = [{transform_indices = @transform_0, window_bounds = array<i64: 16, 32>}, {pipeline_mode = #tpu.pipeline_mode<synchronous>, transform_indices = @transform_1, window_bounds = array<i64: 32, 8>}, {pipeline_mode = #tpu.pipeline_mode<synchronous>, transform_indices = @transform_2, window_bounds = array<i64: 8, 32>}, {transform_indices = @transform_3, window_bounds = array<i64: 16, 32>}]} {
    %c0 = arith.constant 0 : index
    %c0_0 = arith.constant 0 : index
    %0 = vector.load %arg1[%c0, %c0_0] : memref<16x32xf32, #tpu.memory_space<vmem>>, vector<16x32xf32>
    %cst = arith.constant 1.000000e+01 : f32
    %1 = vector.broadcast %cst : f32 to vector<16x32xf32>
    %2 = arith.mulf %0, %1 : vector<16x32xf32>
    %c0_1 = arith.constant 0 : index
    %c0_2 = arith.constant 0 : index
    %3 = vector.load %arg2[%c0_1, %c0_2] : memref<32x8xf32, #tpu.memory_space<vmem>>, vector<32x8xf32>
    %cst_3 = arith.constant dense<0.000000e+00> : vector<16x8xf32>
    %4 = tpu.matmul %2, %3, %cst_3 {dimension_numbers = #tpu.dot_dimension_numbers<[1], [0], [0], [1], [0, 0, 1, 1], [], []>} : vector<16x32xf32>, vector<32x8xf32>, vector<16x8xf32> -> vector<16x8xf32>
    %cst_4 = arith.constant 0.000000e+00 : f32
    %5 = vector.broadcast %cst_4 : f32 to vector<16x8xf32>
    %6 = arith.maximumf %4, %5 : vector<16x8xf32>
    %c0_5 = arith.constant 0 : index
    %c0_6 = arith.constant 0 : index
    %7 = vector.load %arg3[%c0_5, %c0_6] : memref<8x32xf32, #tpu.memory_space<vmem>>, vector<8x32xf32>
    %cst_7 = arith.constant dense<0.000000e+00> : vector<16x32xf32>
    %8 = tpu.matmul %6, %7, %cst_7 {dimension_numbers = #tpu.dot_dimension_numbers<[1], [0], [0], [1], [0, 0, 1, 1], [], []>} : vector<16x8xf32>, vector<8x32xf32>, vector<16x32xf32> -> vector<16x32xf32>
    %cst_8 = arith.constant 0.000000e+00 : f32
    %9 = vector.broadcast %cst_8 : f32 to vector<16x32xf32>
    %10 = arith.maximumf %8, %9 : vector<16x32xf32>
    %cst_9 = arith.constant 0.000000e+00 : f32
    %11 = vector.broadcast %cst_9 : f32 to vector<16x32xf32>
    %12 = arith.subf %11, %10 : vector<16x32xf32>
    %13 = math.exp %12 : vector<16x32xf32>
    %cst_10 = arith.constant 1.000000e+00 : f32
    %14 = vector.broadcast %cst_10 : f32 to vector<16x32xf32>
    %15 = arith.addf %14, %13 : vector<16x32xf32>
    %cst_11 = arith.constant 1.000000e+00 : f32
    %16 = vector.broadcast %cst_11 : f32 to vector<16x32xf32>
    %17 = arith.divf %16, %15 : vector<16x32xf32>
    %18 = arith.mulf %17, %2 : vector<16x32xf32>
    %c0_12 = arith.constant 0 : index
    %c0_13 = arith.constant 0 : index
    %19 = vector.load %arg4[%c0_12, %c0_13] : memref<16x32xf32, #tpu.memory_space<vmem>>, vector<16x32xf32>
    tpu.vector_store %arg4[%c0_12, %c0_13], %18 {strides = array<i32>} : memref<16x32xf32, #tpu.memory_space<vmem>>, vector<16x32xf32>,
    return
  }
  func.func @transform_0(%arg0: i32) -> (i32, i32) {
    %c0_i32 = arith.constant 0 : i32
    %c0_i32_0 = arith.constant 0 : i32
    return %arg0, %c0_i32 : i32, i32
  }
  func.func @transform_1(%arg0: i32) -> (i32, i32) {
    %c0_i32 = arith.constant 0 : i32
    %c0_i32_0 = arith.constant 0 : i32
    %c0_i32_1 = arith.constant 0 : i32
    return %c0_i32, %c0_i32_0 : i32, i32
  }
  func.func @transform_2(%arg0: i32) -> (i32, i32) {
    %c0_i32 = arith.constant 0 : i32
    %c0_i32_0 = arith.constant 0 : i32
    %c0_i32_1 = arith.constant 0 : i32
    return %c0_i32, %c0_i32_0 : i32, i32
  }
  func.func @transform_3(%arg0: i32) -> (i32, i32) {
    %c0_i32 = arith.constant 0 : i32
    %c0_i32_0 = arith.constant 0 : i32
    return %arg0, %c0_i32 : i32, i32
  }
}

</mosaic_0001>

<bundles_post_ra>
// kernel: tpu_custom_call.1
= control target key start
LH: loop header
LB: loop body
LE: loop exit
PB: predicated region body
PF: predicated region fallthrough
CT: control target
= control target key end

     0   :  { %vm23_vm0 = vcmask 261120   ;;  %s356_s0 = inlined_call_operand.vmem [shape: f32[16,32], index: 0, kind: input, shape index: {}]   ;;  %s357_s1 = inlined_call_operand.vmem [shape: f32[32,8], index: 1, kind: input, shape index: {}]   ;;  %s358_s2 = inlined_call_operand.vmem [shape: f32[8,32], index: 2, kind: input, shape index: {}]   ;;  %s359_s3 = inlined_call_operand.hbm [shape: f32[16,32], index: 3, kind: output, shape index: {}]  }
   0x1   :  { %v19_v0 = vld [vmem:[%s357_s1] sm:$0xff]  ;;  %v20_v1 = vld [vmem:[%s357_s1 + $0x8] sm:$0xff]  ;;  %v21_v2 = vld [vmem:[%s357_s1 + $0x10] sm:$0xff] }
   0x2   :  { %v253_v3 = vpack.c.bf16 %v20_v1, %v19_v0  ;;  %v22_v4 = vld [vmem:[%s357_s1 + $0x18] sm:$0xff]  ;;  %v15_v5 = vld [vmem:[%s356_s0] sm:$0xff] }
   0x3   :  { %v257_v6 = vpack.c.bf16 %v22_v4, %v21_v2  ;;  %v17_v7 = vmul.f32 10.0, %v15_v5 }
   0x4   :  { %8 = vsyncpa [#allocation3], 0  ;;  %254 = vmatprep.subr.bf16.mxu0 %v253_v3  ;;  %v16_v8 = vld [vmem:[%s356_s0 + $0x8] sm:$0xff]  ;;  %v107_v10 = vld [vmem:[%s358_s2] sm:$0xff]  ;;  %vm108_vm1 = vcmask 64512   ;;  %s296_s0 = smov [#allocation2]  }
   0x5   :  { %256 = vmatpush3.bf16.msra.mxu0 %v253_v3  ;;  %245 = vmatprep.mubr.msk.f32.mxu0 %vm23_vm0, %v17_v7  ;;  %v18_v9 = vmul.f32 10.0, %v16_v8  ;;  %s213_s2 = sshll.u32 %s296_s0, 4  ;;  %s214_s2 = int_to_ptr.vmem [resolvable:$true] %s213_s2 }
   0x6   :  { %258 = vmatprep.subr.bf16.mxu0 %v257_v6  ;;  %248 = vmatprep.subr.mxu1 %v107_v10  ;;  %s272_s25 = scalar_lea.vmem %s214_s2, 256  ;;  %p277_p1 = scmp.lt.s32.totalorder %s214_s2, %s214_s2 }
   0x7   :  { %249 = vmatpush3.msra.mxu1 %v107_v10  ;;  %p273_p0 = scmp.ne.s32.totalorder %s214_s2, %s272_s25  ;;  %p278_p2 = scmp.lt.s32.totalorder %s272_s25, %s272_s25 }
   0x9   :  { %260 = vmatpush3.bf16.msra.mxu0 %v257_v6  ;;  %p279_p3 = por %p278_p2, %p277_p1 }
   0xb   :  { %p280_p4 = pnand %p279_p3, %p273_p0 }
   0xc   :  { %246 = vmatmul.mubr.msk.f32.vlgmr.msra.gmra.mrb[0].mxu0 %vm23_vm0, %v18_v9 }
  0xdf   :  { %v247_v11 = vpop.f32.mrb[0].mxu0 }
  0xe0   :  { %v96_v12 = vpop.f32.mrb[1].mxu0  ;;  %v106_v14 = vmax.f32 %v247_v11, 0.0 }
  0xe1   :  { %v105_v13 = vmax.f32 %v96_v12, 0.0 }
  0xe3   :  { %250 = vmatprep.mubr.msk.f32.mxu1 %vm108_vm1, %v105_v13 }
  0xe4   :  { %251 = vmatmul.mubr.msk.f32.vlgmr.msra.gmra.mrb[0].mxu1 %vm108_vm1, %v106_v14 }
 0x1b7   :  { %v252_v15 = vpop.f32.mrb[0].mxu1 }
 0x1b8   :  { %v191_v16 = vmax.f32 %v252_v15, 0.0  ;;  %v181_v17 = vpop.f32.mrb[1].mxu1 }
 0x1b9   :  { %v190_v18 = vmax.f32 %v181_v17, 0.0 }
 0x1ba   :  { %v193_v19 = vsub.f32 0.0, %v191_v16 }
 0x1bb   :  { %v192_v20 = vsub.f32 0.0, %v190_v18 }
 0x1bc   :  { %v196_v21 = vmul.f32 1.442695, %v193_v19 }
 0x1bd   :  { %v194_v22 = vmul.f32 1.442695, %v192_v20 }
 0x1be   :  { %264 = vpow2.f32 %v196_v21 }
 0x1bf   :  { %266 = vpow2.f32 %v194_v22 }
 0x1c8   :  { %v265_v23 = vpop.eup %264 }
 0x1c9   :  { %v267_v24 = vpop.eup %266  ;;  %v199_v25 = vadd.f32 1.0, %v265_v23 }
 0x1ca   :  { %v198_v26 = vadd.f32 1.0, %v267_v24 }
 0x1cb   :  { %268 = vrcp.f32 %v199_v25 }
 0x1cc   :  { %270 = vrcp.f32 %v198_v26 }
 0x1d5   :  { %v269_v27 = vpop.eup %268 }
 0x1d6   :  { %v271_v28 = vpop.eup %270  ;;  %v205_v29 = vmul.f32 %v269_v27, %v18_v9 }
 0x1d7   :  { %v204_v30 = vmul.f32 %v271_v28, %v17_v7 }
 0x1d8   :  { %207 = vst.msk [vmem:[#allocation2 + $0x8] sm:$0xff] %vm23_vm0, %v205_v29 }
 0x1d9   :  { %206 = vst.msk [vmem:[#allocation2] sm:$0xff] %vm23_vm0, %v204_v30 }
 0x1da   :  { %283 = shalt.err (!%p280_p4)
}
 0x1db   :  { %s284_s28 = scalar_lea.hbm %s359_s3, 256 }
 0x1dc   :  { %p285_p5 = scmp.ne.s32.totalorder %s359_s3, %s284_s28  ;;  %p288_p6 = scmp.lt.u32.totalorder %s284_s28, %s359_s3 }
 0x1de   :  { %p290_p7 = pnand %p288_p6, %p285_p5 }
 0x1e0   :  { %293 = shalt.err (!%p290_p7)
}
 0x1e1   :  { %s297_s6 = smov 128   ;;  %s298_s7 = smov 8  }
 0x1e2   :  { %219 = dma.vmem_to_hbm [thread:$0]  %s214_s2, 256, %s359_s3, [#allocation3], %s297_s6, %s297_s6, %s298_s7  }
 0x1e3   :  { %294 = dma.done.wait [#allocation3], 256  }
 0x1e4   :  { %295 = vsyncadd [#allocation3], 4294967040 }
 0x1e5   :  { %223 = vsyncpa [#allocation3], 1 }

</bundles_post_ra>
